<compile_context>
chip_gen: v5e
topology: v5e:2x2
jax: 0.10.0
libtpu: 0.0.40
codegen_flags: <defaults>
</compile_context>

<pallas_src>
import math
from functools import partial

import jax
import jax.numpy as jnp
from jax.experimental import pallas as pl
from jax.experimental.pallas import tpu as pltpu


SCORE_COLS = 128  # lane-dense width of the fused score output of kernel A


def round_up(x, m):
    return ((x + m - 1) // m) * m


def _vmem_limit_bytes():
    """Scoped-VMEM cap derived from the actual chip (v5e/v6e: 128 MiB, v7x: 64 MiB)."""
    cap = 64 * 1024 * 1024
    try:
        cap = int(pltpu.get_tpu_info().vmem_capacity_bytes)
    except Exception:
        pass
    return max(32 * 1024 * 1024, min(cap - 16 * 1024 * 1024, 100 * 1024 * 1024))


def pick_tm(n_pad, hop, heads, vmem_limit):
    """Largest destination-row tile whose kernel-B working set fits the VMEM budget."""
    budget = int(0.6 * vmem_limit)
    for tm in (512, 256, 128):
        if n_pad % tm:
            continue
        working = (2 * tm * n_pad               # adj tile, int8, double-buffered
                   + 4 * 4 * tm * n_pad         # mask_bias + live f32 (TM,NP) temporaries
                   + 2 * 2 * n_pad * hop        # resident z (bf16)
                   + 2 * 4 * heads * n_pad      # elT (f32)
                   + 2 * (2 + 4) * tm * hop)    # residual (bf16) + output (f32) tiles
        if working <= budget:
            return tm
    return 128


# ---------------------------------------------------------------------------
# Kernel A: fused projection + attention scores
#   z      = x @ W                          (bf16 out, f32 accumulation)
#   scores = z @ attn_mat                   (columns 0..H-1 = el, H..2H-1 = er)
# ---------------------------------------------------------------------------
def proj_scores_kernel(x_ref, w_ref, attn_ref, z_ref, s_ref):
    z32 = jnp.dot(x_ref[...], w_ref[...], preferred_element_type=jnp.float32)
    zb = z32.astype(jnp.bfloat16)
    z_ref[...] = zb
    s_ref[...] = jnp.dot(zb, attn_ref[...], preferred_element_type=jnp.float32)


def proj_scores(x, w, attn_mat, *, tm, vmem_limit):
    n_pad, d_in = x.shape
    hop = w.shape[1]
    flops = 2 * n_pad * d_in * hop + 2 * n_pad * hop * SCORE_COLS
    bytes_acc = 2 * (n_pad * d_in + d_in * hop + hop * SCORE_COLS + n_pad * hop) \
        + 4 * n_pad * SCORE_COLS
    return pl.pallas_call(
        proj_scores_kernel,
        out_shape=(jax.ShapeDtypeStruct((n_pad, hop), jnp.bfloat16),
                   jax.ShapeDtypeStruct((n_pad, SCORE_COLS), jnp.float32)),
        grid=(n_pad // tm,),
        in_specs=[
            pl.BlockSpec((tm, d_in), lambda i: (i, 0)),        # x row tile (bf16)
            pl.BlockSpec((d_in, hop), lambda i: (0, 0)),       # W resident (bf16)
            pl.BlockSpec((hop, SCORE_COLS), lambda i: (0, 0)),  # attn matrix (bf16)
        ],
        out_specs=[
            pl.BlockSpec((tm, hop), lambda i: (i, 0)),
            pl.BlockSpec((tm, SCORE_COLS), lambda i: (i, 0)),
        ],
        compiler_params=pltpu.CompilerParams(
            dimension_semantics=("parallel",),
            vmem_limit_bytes=vmem_limit),
        cost_estimate=pl.CostEstimate(flops=int(flops), transcendentals=0,
                                      bytes_accessed=int(bytes_acc)),
    )(x, w, attn_mat)


# ---------------------------------------------------------------------------
# Kernel A': plain projection (res_fc, bias=False), bf16 in/out, f32 accumulation
# ---------------------------------------------------------------------------
def linear_kernel(x_ref, w_ref, o_ref):
    o_ref[...] = jnp.dot(x_ref[...], w_ref[...],
                         preferred_element_type=jnp.float32).astype(o_ref.dtype)


def linear_proj(x, w, *, tm, vmem_limit):
    n_pad, d_in = x.shape
    d_out = w.shape[1]
    flops = 2 * n_pad * d_in * d_out
    bytes_acc = 2 * (n_pad * d_in + d_in * d_out + n_pad * d_out)
    return pl.pallas_call(
        linear_kernel,
        out_shape=jax.ShapeDtypeStruct((n_pad, d_out), jnp.bfloat16),
        grid=(n_pad // tm,),
        in_specs=[
            pl.BlockSpec((tm, d_in), lambda i: (i, 0)),
            pl.BlockSpec((d_in, d_out), lambda i: (0, 0)),
        ],
        out_specs=pl.BlockSpec((tm, d_out), lambda i: (i, 0)),
        compiler_params=pltpu.CompilerParams(
            dimension_semantics=("parallel",),
            vmem_limit_bytes=vmem_limit),
        cost_estimate=pl.CostEstimate(flops=int(flops), transcendentals=0,
                                      bytes_accessed=int(bytes_acc)),
    )(x, w)


# ---------------------------------------------------------------------------
# Kernel B: fused masked edge-softmax + aggregation + bias/residual + ELU
# ---------------------------------------------------------------------------
def gat_attn_kernel(*refs, heads, op, negative_slope, apply_elu, has_res):
    if has_res:
        adj_ref, z_ref, elT_ref, er_ref, bias_ref, res_ref, o_ref = refs
    else:
        adj_ref, z_ref, elT_ref, er_ref, bias_ref, o_ref = refs
        res_ref = None

    # Adjacency mask hoisted out of the head loop: additive bias, computed once.
    mask_bias = jnp.where(adj_ref[...] > 0,
                          jnp.float32(0.0), jnp.float32(-1e30))     # (TM, NP)
    neg = jnp.float32(negative_slope)

    for h in range(heads):
        el_row = elT_ref[h:h + 1, :]                                 # (1, NP)  source scores
        er_col = er_ref[:, h:h + 1]                                  # (TM, 1)  dest scores
        e = er_col + el_row                                          # (TM, NP)
        e = jnp.where(e > 0, e, neg * e)                             # LeakyReLU
        e = e + mask_bias                                            # mask non-edges
        m = jnp.max(e, axis=1, keepdims=True)                        # (TM, 1)
        w = jnp.exp(e - m)                                           # off-edges underflow to 0
        denom = jnp.sum(w, axis=1, keepdims=True)
        inv = pl.reciprocal(jnp.maximum(denom, jnp.float32(1e-20)), approx=True)

        # Aggregate with UNNORMALIZED weights in bf16, then scale the small (TM, OP)
        # result (normalize-after-aggregation: saves H x (TM,NP) VPU multiplies).
        z_h = z_ref[:, h * op:(h + 1) * op]                          # (NP, OP) bf16
        out_h = jnp.dot(w.astype(jnp.bfloat16), z_h,
                        preferred_element_type=jnp.float32) * inv    # (TM, OP) f32

        out_h = out_h + bias_ref[:, h * op:(h + 1) * op]
        if has_res:
            out_h = out_h + res_ref[:, h * op:(h + 1) * op].astype(jnp.float32)
        if apply_elu:
            out_h = jnp.where(out_h > 0, out_h,
                              jnp.exp(jnp.minimum(out_h, 0.0)) - 1.0)
        o_ref[:, h * op:(h + 1) * op] = out_h.astype(o_ref.dtype)    # per-head direct write


def gat_conv_layer(adj_i8, x_bf16, p, *, tm, negative_slope, vmem_limit):
    n_pad = x_bf16.shape[0]
    heads, op = p["heads"], p["op"]
    hop = heads * op

    # --- projection + scores (Pallas kernel A, fused) ---
    z, scores = proj_scores(x_bf16, p["w"], p["attn_mat"], tm=tm, vmem_limit=vmem_limit)
    elT = scores[:, :heads].T                # (H, NP)   tiny XLA transpose (layout only)
    er = scores[:, heads:2 * heads]          # (NP, H)

    # --- residual term (compiled away entirely when unused) ---
    if p["res"] is None:
        res, has_res = None, False
    elif isinstance(p["res"], str):          # identity residual
        res, has_res = x_bf16, True
    else:                                    # learned res_fc (Pallas kernel A')
        res, has_res = linear_proj(x_bf16, p["res"], tm=tm, vmem_limit=vmem_limit), True

    # Hidden layers feed the next layer's bf16 matmul; final layer keeps f32 logits.
    out_dtype = jnp.float32 if p["combine_mean"] else jnp.bfloat16

    kernel = partial(gat_attn_kernel, heads=heads, op=op,
                     negative_slope=float(negative_slope),
                     apply_elu=p["apply_elu"], has_res=has_res)

    in_specs = [
        pl.BlockSpec((tm, n_pad), lambda i: (i, 0)),     # adj row tile (int8, dests)
        pl.BlockSpec((n_pad, hop), lambda i: (0, 0)),    # z for all sources (bf16, resident)
        pl.BlockSpec((heads, n_pad), lambda i: (0, 0)),  # el^T (source scores)
        pl.BlockSpec((tm, heads), lambda i: (i, 0)),     # er tile (dest scores)
        pl.BlockSpec((1, hop), lambda i: (0, 0)),        # bias
    ]
    args = [adj_i8, z, elT, er, p["bias"]]
    if has_res:
        in_specs.append(pl.BlockSpec((tm, hop), lambda i: (i, 0)))
        args.append(res)

    flops = 2 * n_pad * n_pad * hop + 10 * heads * n_pad * n_pad
    bytes_acc = (n_pad * n_pad                              # adj (int8)
                 + 2 * n_pad * hop                          # z (bf16)
                 + 4 * (2 * heads * n_pad + hop)            # scores + bias
                 + (2 * n_pad * hop if has_res else 0)      # residual (bf16)
                 + (4 if out_dtype == jnp.float32 else 2) * n_pad * hop)

    return pl.pallas_call(
        kernel,
        out_shape=jax.ShapeDtypeStruct((n_pad, hop), out_dtype),
        grid=(n_pad // tm,),
        in_specs=in_specs,
        out_specs=pl.BlockSpec((tm, hop), lambda i: (i, 0)),   # lane-dense (hop % 128 == 0)
        compiler_params=pltpu.CompilerParams(
            dimension_semantics=("parallel",),
            vmem_limit_bytes=vmem_limit),
        cost_estimate=pl.CostEstimate(flops=int(flops),
                                      transcendentals=int(heads * n_pad * n_pad),
                                      bytes_accessed=int(bytes_acc)),
    )(*args)


# ---------------------------------------------------------------------------
# Parameters (padded to TPU-friendly shapes) + model forward
# ---------------------------------------------------------------------------
def glorot(key, shape):
    fan_in, fan_out = shape[-2], shape[-1]
    limit = math.sqrt(6.0 / (fan_in + fan_out))
    return jax.random.uniform(key, shape, jnp.float32, -limit, limit)


def pad_heads_cols(w, heads, d_out, op):
    """Scatter real per-head columns (width d_out) into padded per-head slots (width op)."""
    if op == d_out:
        return w
    lead = w.shape[:-1]
    w3 = w.reshape(lead + (heads, d_out))
    w3 = jnp.pad(w3, [(0, 0)] * len(lead) + [(0, 0), (0, op - d_out)])
    return w3.reshape(lead + (heads * op,))


def init_gat_params(key, in_feats, num_classes, size_hidden, n_layers, heads, residual):
    # (d_in, d_out_per_head, H, use_residual, apply_elu, combine_mean)
    specs = [(in_feats, size_hidden, heads[0], False, True, False)]
    for l in range(1, n_layers):
        specs.append((size_hidden * heads[l - 1], size_hidden, heads[l], residual, True, False))
    specs.append((size_hidden * heads[-2], num_classes, heads[-1], residual, False, True))

    params = []
    for (d_in, d_out, h, use_res, elu, mean) in specs:
        key, kw, kl, kr, kb, ks = jax.random.split(key, 6)
        d_in_p = round_up(d_in, 128)
        op = round_up(d_out, 128 // math.gcd(h, 128))      # H*op is a multiple of 128
        if not mean:
            assert op == d_out, "hidden H*size_hidden must already be a multiple of 128"
        assert 2 * h <= SCORE_COLS

        w = glorot(kw, (d_in, h * d_out))
        w = pad_heads_cols(w, h, d_out, op)
        w = jnp.pad(w, ((0, d_in_p - d_in), (0, 0))).astype(jnp.bfloat16)   # (d_in_p, H*op)

        attn_l = glorot(kl, (h, d_out))
        attn_r = glorot(kr, (h, d_out))
        attn_mat = jnp.zeros((h * op, SCORE_COLS), jnp.float32)
        for hh in range(h):
            attn_mat = attn_mat.at[hh * op:hh * op + d_out, hh].set(attn_l[hh])
            attn_mat = attn_mat.at[hh * op:hh * op + d_out, h + hh].set(attn_r[hh])
        attn_mat = attn_mat.astype(jnp.bfloat16)

        bias = 0.1 * jax.random.normal(kb, (h, d_out), jnp.float32)
        bias = jnp.pad(bias, ((0, 0), (0, op - d_out))).reshape(1, h * op)  # f32

        if not use_res:
            res = None
        elif d_in == h * d_out and d_in_p == h * op:
            res = "identity"                                # DGL Identity res_fc
        else:
            rw = glorot(ks, (d_in, h * d_out))
            rw = pad_heads_cols(rw, h, d_out, op)
            res = jnp.pad(rw, ((0, d_in_p - d_in), (0, 0))).astype(jnp.bfloat16)

        params.append(dict(w=w, attn_mat=attn_mat, bias=bias, res=res,
                           heads=h, op=op, d_in_p=d_in_p, d_out=d_out,
                           apply_elu=elu, combine_mean=mean))
    return params


def gat_forward(adj, features, params, *, negative_slope=0.2):
    n = features.shape[0]
    n_pad = round_up(n, 128)
    adj_i8 = jnp.zeros((n_pad, n_pad), jnp.int8).at[:n, :n].set(adj.astype(jnp.int8))

    vmem_limit = _vmem_limit_bytes()
    max_hop = max(p["heads"] * p["op"] for p in params)
    max_heads = max(p["heads"] for p in params)
    tm = pick_tm(n_pad, max_hop, max_heads, vmem_limit)

    h = features.astype(jnp.bfloat16)
    for p in params:
        hp = jnp.zeros((n_pad, p["d_in_p"]), jnp.bfloat16)
        hp = hp.at[:h.shape[0], :h.shape[1]].set(h)          # zero-pad rows + feature lanes
        h = gat_conv_layer(adj_i8, hp, p, tm=tm,
                           negative_slope=negative_slope, vmem_limit=vmem_limit)

    # Final layer: lane-dense (N_pad, H*OP) slab from the kernel; head-mean + un-pad here.
    last = params[-1]
    out = h.reshape(n_pad, last["heads"], last["op"]).mean(axis=1)
    return out[:n, :last["d_out"]]


# ---------------------------------------------------------------------------
# Demo
# ---------------------------------------------------------------------------
if __name__ == "__main__":
    key = jax.random.PRNGKey(0)

    N = 100                 # nodes (padded to 128 internally)
    in_feats = 16           # padded to 128
    size_hidden = 32        # 4 heads * 32 = 128 -> lane-dense hidden width
    num_classes = 4
    n_layers = 2
    heads = [4, 4, 4]       # n_layers + 1 GATConv layers
    negative_slope = 0.2
    residual = True

    k_adj, k_feat, k_par = jax.random.split(key, 3)
    adj = (jax.random.uniform(k_adj, (N, N)) < 0.15).astype(jnp.float32)
    adj = jnp.maximum(adj, jnp.eye(N, dtype=jnp.float32))   # self-loops: no zero in-degree
    features = jax.random.normal(k_feat, (N, in_feats), dtype=jnp.float32)

    params = init_gat_params(k_par, in_feats, num_classes, size_hidden,
                             n_layers, heads, residual)

    logits = gat_forward(adj, features, params, negative_slope=negative_slope)
    logits = jax.block_until_ready(logits)

    assert logits.shape == (N, num_classes), logits.shape
    assert bool(jnp.all(jnp.isfinite(logits)))
    print("KERNEL_OK")
</pallas_src>

<mosaic_0001>
module attributes {stable_mosaic.version = 11 : i64} {
  func.func @proj_scores_kernel(%arg0: i32, %arg1: memref<128x128xbf16, #tpu.memory_space<vmem>>, %arg2: memref<128x128xbf16, #tpu.memory_space<vmem>>, %arg3: memref<128x128xbf16, #tpu.memory_space<vmem>>, %arg4: memref<128x128xbf16, #tpu.memory_space<vmem>>, %arg5: memref<128x128xf32, #tpu.memory_space<vmem>>) attributes {dimension_semantics = [#tpu.dimension_semantics<parallel>], iteration_bounds = array<i64: 1>, scalar_prefetch = 0 : i64, scratch_operands = 0 : i64, tpu.core_type = #tpu.core_type<tc>, window_params = [{transform_indices = @transform_0, window_bounds = array<i64: 128, 128>}, {pipeline_mode = #tpu.pipeline_mode<synchronous>, transform_indices = @transform_1, window_bounds = array<i64: 128, 128>}, {pipeline_mode = #tpu.pipeline_mode<synchronous>, transform_indices = @transform_2, window_bounds = array<i64: 128, 128>}, {transform_indices = @transform_3, window_bounds = array<i64: 128, 128>}, {transform_indices = @transform_4, window_bounds = array<i64: 128, 128>}]} {
    %c0 = arith.constant 0 : index
    %c0_0 = arith.constant 0 : index
    %0 = vector.load %arg1[%c0, %c0_0] : memref<128x128xbf16, #tpu.memory_space<vmem>>, vector<128x128xbf16>
    %c0_1 = arith.constant 0 : index
    %c0_2 = arith.constant 0 : index
    %1 = vector.load %arg2[%c0_1, %c0_2] : memref<128x128xbf16, #tpu.memory_space<vmem>>, vector<128x128xbf16>
    %cst = arith.constant dense<0.000000e+00> : vector<128x128xf32>
    %2 = tpu.matmul %0, %1, %cst {dimension_numbers = #tpu.dot_dimension_numbers<[1], [0], [0], [1], [0, 0, 1, 1], [], []>} : vector<128x128xbf16>, vector<128x128xbf16>, vector<128x128xf32> -> vector<128x128xf32>
    %3 = arith.truncf %2 : vector<128x128xf32> to vector<128x128xbf16>
    %c0_3 = arith.constant 0 : index
    %c0_4 = arith.constant 0 : index
    %4 = vector.load %arg4[%c0_3, %c0_4] : memref<128x128xbf16, #tpu.memory_space<vmem>>, vector<128x128xbf16>
    tpu.vector_store %arg4[%c0_3, %c0_4], %3 {strides = array<i32>} : memref<128x128xbf16, #tpu.memory_space<vmem>>, vector<128x128xbf16>,
    %c0_5 = arith.constant 0 : index
    %c0_6 = arith.constant 0 : index
    %5 = vector.load %arg3[%c0_5, %c0_6] : memref<128x128xbf16, #tpu.memory_space<vmem>>, vector<128x128xbf16>
    %cst_7 = arith.constant dense<0.000000e+00> : vector<128x128xf32>
    %6 = tpu.matmul %3, %5, %cst_7 {dimension_numbers = #tpu.dot_dimension_numbers<[1], [0], [0], [1], [0, 0, 1, 1], [], []>} : vector<128x128xbf16>, vector<128x128xbf16>, vector<128x128xf32> -> vector<128x128xf32>
    %c0_8 = arith.constant 0 : index
    %c0_9 = arith.constant 0 : index
    %7 = vector.load %arg5[%c0_8, %c0_9] : memref<128x128xf32, #tpu.memory_space<vmem>>, vector<128x128xf32>
    tpu.vector_store %arg5[%c0_8, %c0_9], %6 {strides = array<i32>} : memref<128x128xf32, #tpu.memory_space<vmem>>, vector<128x128xf32>,
    return
  }
  func.func @transform_0(%arg0: i32) -> (i32, i32) {
    %c0_i32 = arith.constant 0 : i32
    %c0_i32_0 = arith.constant 0 : i32
    return %arg0, %c0_i32 : i32, i32
  }
  func.func @transform_1(%arg0: i32) -> (i32, i32) {
    %c0_i32 = arith.constant 0 : i32
    %c0_i32_0 = arith.constant 0 : i32
    %c0_i32_1 = arith.constant 0 : i32
    return %c0_i32, %c0_i32_0 : i32, i32
  }
  func.func @transform_2(%arg0: i32) -> (i32, i32) {
    %c0_i32 = arith.constant 0 : i32
    %c0_i32_0 = arith.constant 0 : i32
    %c0_i32_1 = arith.constant 0 : i32
    return %c0_i32, %c0_i32_0 : i32, i32
  }
  func.func @transform_3(%arg0: i32) -> (i32, i32) {
    %c0_i32 = arith.constant 0 : i32
    %c0_i32_0 = arith.constant 0 : i32
    return %arg0, %c0_i32 : i32, i32
  }
  func.func @transform_4(%arg0: i32) -> (i32, i32) {
    %c0_i32 = arith.constant 0 : i32
    %c0_i32_0 = arith.constant 0 : i32
    return %arg0, %c0_i32 : i32, i32
  }
}

</mosaic_0001>

<bundles_post_ra>
// kernel: tpu_custom_call.1
= control target key start
LH: loop header
LB: loop body
LE: loop exit
PB: predicated region body
PF: predicated region fallthrough
CT: control target
= control target key end

     0   :  { %10 = vsyncpa [#allocation3], 0  ;;  %s870_s0 = inlined_call_operand.hbm [shape: bf16[128,128], index: 0, kind: input, shape index: {}]   ;;  %s871_s1 = inlined_call_operand.hbm [shape: bf16[128,128], index: 1, kind: input, shape index: {}]   ;;  %s872_s2 = inlined_call_operand.hbm [shape: bf16[128,128], index: 2, kind: input, shape index: {}]   ;;  %s873_s3 = inlined_call_operand.hbm [shape: bf16[128,128], index: 3, kind: output, shape index: {0}]   ;;  %s874_s4 = inlined_call_operand.hbm [shape: f32[128,128], index: 4, kind: output, shape index: {1}]  }
   0x1   :  { %11 = vsyncpa [#allocation6], 0 }
   0x2   :  { %12 = vsyncpa [#allocation4], 0 }
   0x3   :  { %13 = vsyncpa [#allocation10], 0  ;;  %s31_s17 = sshll.u32 %s871_s1, 4  ;;  %s809_s18 = smov [#allocation5]   ;;  %s32_s17 = int_to_ptr.hbm [resolvable:$true] %s31_s17 }
   0x4   :  { %s33_s19 = sshll.u32 %s809_s18, 4  ;;  %s18_s22 = sshll.u32 %s870_s0, 4  ;;  %s34_s19 = int_to_ptr.vmem [resolvable:$true] %s33_s19  ;;  %s19_s22 = int_to_ptr.hbm [resolvable:$true] %s18_s22 }
   0x5   :  { %s810_s23 = smov 64   ;;  %s811_s24 = smov 4  }
   0x6   :  { %39 = dma.hbm_to_vmem [thread:$0]  %s32_s17, 1024, %s34_s19, [#allocation6], %s810_s23, %s810_s23, %s811_s24  }
   0x7   :  { %s812_s25 = smov [#allocation2]   ;;  %s44_s1 = sshll.u32 %s872_s2, 4  ;;  %s45_s1 = int_to_ptr.hbm [resolvable:$true] %s44_s1 }
   0x8   :  { %s20_s26 = sshll.u32 %s812_s25, 4  ;;  %s813_s0 = smov [#allocation7]   ;;  %s21_s26 = int_to_ptr.vmem [resolvable:$true] %s20_s26 }
   0x9   :  { %26 = dma.hbm_to_vmem [thread:$0]  %s19_s22, 1024, %s21_s26, [#allocation3], %s810_s23, %s810_s23, %s811_s24  }
   0xa   :  { %s46_s29 = sshll.u32 %s813_s0, 4  ;;  %s47_s29 = int_to_ptr.vmem [resolvable:$true] %s46_s29 }
   0xb   :  { %52 = dma.hbm_to_vmem [thread:$0]  %s45_s1, 1024, %s47_s29, [#allocation6], %s810_s23, %s810_s23, %s811_s24  }
   0xc   :  { %801 = dma.done.wait [#allocation3], 1024  }
   0xd   :  { %802 = vsyncadd [#allocation3], 4294966272 }
   0xe   :  { %803 = dma.done.wait [#allocation6], 2048  }
   0xf   :  { %804 = vsyncadd [#allocation6], 4294965248  ;;  %v600_v0 = vld [vmem:[#allocation5 + $0x38] sm:$0xff]  ;;  %v599_v1 = vld [vmem:[#allocation5 + $0x30] sm:$0xff]  ;;  %s814_s2 = smov [#allocation8]   ;;  %s457_s7 = sshll.u32 %s873_s3, 4  ;;  %s458_s7 = int_to_ptr.hbm [resolvable:$true] %s457_s7 }
  0x10   :  { %193 = vmatpush.bf16.msra.mxu0 %v600_v0  ;;  %656 = vmatpush.bf16.msra.mxu2 %v600_v0  ;;  %v598_v2 = vld [vmem:[#allocation5 + $0x28] sm:$0xff]  ;;  %v597_v3 = vld [vmem:[#allocation5 + $0x20] sm:$0xff]  ;;  %v596_v4 = vld [vmem:[#allocation5 + $0x18] sm:$0xff]  ;;  %s455_s30 = sshll.u32 %s814_s2, 4  ;;  %s815_s3 = smov [#allocation9]   ;;  %s456_s30 = int_to_ptr.vmem [resolvable:$true] %s455_s30 }
  0x11   :  { %v595_v5 = vld [vmem:[#allocation5 + $0x10] sm:$0xff]  ;;  %v594_v6 = vld [vmem:[#allocation5 + $0x8] sm:$0xff]  ;;  %v593_v7 = vld [vmem:[#allocation5] sm:$0xff]  ;;  %s468_s8 = sshll.u32 %s815_s3, 4  ;;  %s470_s11 = sshll.u32 %s874_s4, 4  ;;  %s469_s8 = int_to_ptr.vmem [resolvable:$true] %s468_s8  ;;  %s471_s11 = int_to_ptr.hbm [resolvable:$true] %s470_s11 }
  0x12   :  { %v585_v8 = vld [vmem:[#allocation2] sm:$0xff]  ;;  %v586_v10 = vld [vmem:[#allocation2 + $0x8] sm:$0xff]  ;;  %v608_v12 = vld [vmem:[#allocation7 + $0x38] sm:$0xff]  ;;  %s816_s12 = smov 128   ;;  %s817_s13 = smov 8  }
  0x13   :  { %v589_v9 = vld [vmem:[#allocation2 + $0x20] sm:$0xff]  ;;  %v590_v11 = vld [vmem:[#allocation2 + $0x28] sm:$0xff]  ;;  %386 = vmatpush.bf16.msra.mxu1 %v608_v12  ;;  %v607_v13 = vld [vmem:[#allocation7 + $0x30] sm:$0xff]  ;;  %664 = vmatpush.bf16.msra.mxu3 %v608_v12 }
  0x14   :  { %194 = vmatpush.bf16.msra.mxu0 %v599_v1  ;;  %657 = vmatpush.bf16.msra.mxu2 %v599_v1  ;;  %v606_v14 = vld [vmem:[#allocation7 + $0x28] sm:$0xff]  ;;  %v605_v15 = vld [vmem:[#allocation7 + $0x20] sm:$0xff]  ;;  %v587_v16 = vld [vmem:[#allocation2 + $0x10] sm:$0xff] }
  0x15   :  { %v591_v17 = vld [vmem:[#allocation2 + $0x30] sm:$0xff]  ;;  %v588_v18 = vld [vmem:[#allocation2 + $0x18] sm:$0xff]  ;;  %v602_v22 = vld [vmem:[#allocation7 + $0x8] sm:$0xff] }
  0x16   :  { %v592_v19 = vld [vmem:[#allocation2 + $0x38] sm:$0xff]  ;;  %v603_v21 = vld [vmem:[#allocation7 + $0x10] sm:$0xff]  ;;  %v601_v23 = vld [vmem:[#allocation7] sm:$0xff] }
  0x17   :  { %387 = vmatpush.bf16.msra.mxu1 %v607_v13  ;;  %665 = vmatpush.bf16.msra.mxu3 %v607_v13  ;;  %v604_v20 = vld [vmem:[#allocation7 + $0x18] sm:$0xff] }
  0x18   :  { %195 = vmatpush.bf16.msra.mxu0 %v598_v2  ;;  %658 = vmatpush.bf16.msra.mxu2 %v598_v2 }
  0x1b   :  { %388 = vmatpush.bf16.msra.mxu1 %v606_v14  ;;  %666 = vmatpush.bf16.msra.mxu3 %v606_v14 }
  0x1c   :  { %196 = vmatpush.bf16.msra.mxu0 %v597_v3  ;;  %659 = vmatpush.bf16.msra.mxu2 %v597_v3 }
  0x1f   :  { %389 = vmatpush.bf16.msra.mxu1 %v605_v15  ;;  %667 = vmatpush.bf16.msra.mxu3 %v605_v15 }
  0x20   :  { %197 = vmatpush.bf16.msra.mxu0 %v596_v4  ;;  %660 = vmatpush.bf16.msra.mxu2 %v596_v4 }
  0x23   :  { %390 = vmatpush.bf16.msra.mxu1 %v604_v20  ;;  %668 = vmatpush.bf16.msra.mxu3 %v604_v20 }
  0x24   :  { %198 = vmatpush.bf16.msra.mxu0 %v595_v5  ;;  %661 = vmatpush.bf16.msra.mxu2 %v595_v5 }
  0x27   :  { %391 = vmatpush.bf16.msra.mxu1 %v603_v21  ;;  %669 = vmatpush.bf16.msra.mxu3 %v603_v21 }
  0x28   :  { %199 = vmatpush.bf16.msra.mxu0 %v594_v6  ;;  %662 = vmatpush.bf16.msra.mxu2 %v594_v6 }
  0x2b   :  { %392 = vmatpush.bf16.msra.mxu1 %v602_v22  ;;  %670 = vmatpush.bf16.msra.mxu3 %v602_v22 }
  0x2c   :  { %200 = vmatpush.bf16.msra.mxu0 %v593_v7  ;;  %663 = vmatpush.bf16.msra.mxu2 %v593_v7 }
  0x2f   :  { %201 = vmatmul.bf16.vlgmr.msra.gmra.mxu0 %v585_v8  ;;  %221 = vmatmul.bf16.vlgmr.msra.gmra.mxu2 %v589_v9 }
  0x30   :  { %393 = vmatpush.bf16.msra.mxu1 %v601_v23  ;;  %671 = vmatpush.bf16.msra.mxu3 %v601_v23 }
  0x3f   :  { %206 = vmatmul.bf16.gmra.mxu0 %v586_v10  ;;  %226 = vmatmul.bf16.gmra.mxu2 %v590_v11 }
  0x4f   :  { %211 = vmatmul.bf16.gmra.mxu0 %v587_v16  ;;  %231 = vmatmul.bf16.gmra.mxu2 %v591_v17 }
  0x5f   :  { %216 = vmatmul.bf16.gmra.mxu0 %v588_v18  ;;  %236 = vmatmul.bf16.gmra.mxu2 %v592_v19 }
  0xac   :  { %v202_v24 = vpop.f32.mrf.mxu0 }
  0xad   :  { %v242_v25 = vpack.c.bf16 %v202_v24, %v202_v24 }
  0xaf   :  { %v306_v28 = vunpack.c.l.b16 %v242_v25 }
  0xb2   :  { %v222_v26 = vpop.f32.mrf.mxu2 }
  0xb3   :  { %v250_v32 = vpack.c.bf16 %v222_v26, %v222_v26 }
  0xb4   :  { %v204_v27 = vpop.f32.mrf.mxu0 }
  0xb5   :  { %v243_v29 = vpack.c.bf16 %v204_v27, %v204_v27  ;;  %v612_v30 = vpack.c.bf16 %v204_v27, %v202_v24  ;;  %v314_v38 = vunpack.c.l.b16 %v250_v32 }
  0xb7   :  { %613 = vst [vmem:[#allocation8] sm:$0xff] %v612_v30   ;;  %v307_v31 = vunpack.c.l.b16 %v243_v29 }
  0xb9   :  { %v322_v33 = vpack.c.b16 %v307_v31, %v306_v28 }
  0xba   :  { %v224_v34 = vpop.f32.mrf.mxu2 }
  0xbb   :  { %v251_v35 = vpack.c.bf16 %v224_v34, %v224_v34  ;;  %v632_v36 = vpack.c.bf16 %v224_v34, %v222_v26  ;;  %394 = vmatmul.bf16.vlgmr.msra.gmra.mxu1 %v322_v33 }
  0xbc   :  { %v207_v37 = vpop.f32.mrf.mxu0 }
  0xbd   :  { %652 = vst [vmem:[#allocation8 + $0x20] sm:$0xff] %v632_v36   ;;  %v315_v39 = vunpack.c.l.b16 %v251_v35  ;;  %v244_v41 = vpack.c.bf16 %v207_v37, %v207_v37 }
  0xbf   :  { %v326_v40 = vpack.c.b16 %v315_v39, %v314_v38  ;;  %v308_v44 = vunpack.c.l.b16 %v244_v41 }
  0xc1   :  { %414 = vmatmul.bf16.vlgmr.msra.gmra.mxu3 %v326_v40 }
  0xc2   :  { %v227_v42 = vpop.f32.mrf.mxu2 }
  0xc3   :  { %v252_v48 = vpack.c.bf16 %v227_v42, %v227_v42 }
  0xc4   :  { %v209_v43 = vpop.f32.mrf.mxu0 }
  0xc5   :  { %v245_v45 = vpack.c.bf16 %v209_v43, %v209_v43  ;;  %v617_v46 = vpack.c.bf16 %v209_v43, %v207_v37  ;;  %v316_v54 = vunpack.c.l.b16 %v252_v48 }
  0xc7   :  { %649 = vst [vmem:[#allocation8 + $0x8] sm:$0xff] %v617_v46   ;;  %v309_v47 = vunpack.c.l.b16 %v245_v45 }
  0xc9   :  { %v323_v49 = vpack.c.b16 %v309_v47, %v308_v44 }
  0xca   :  { %v229_v50 = vpop.f32.mrf.mxu2 }
  0xcb   :  { %v253_v51 = vpack.c.bf16 %v229_v50, %v229_v50  ;;  %v637_v52 = vpack.c.bf16 %v229_v50, %v227_v42  ;;  %399 = vmatmul.bf16.gmra.mxu1 %v323_v49 }
  0xcc   :  { %v212_v53 = vpop.f32.mrf.mxu0 }
  0xcd   :  { %653 = vst [vmem:[#allocation8 + $0x28] sm:$0xff] %v637_v52   ;;  %v317_v55 = vunpack.c.l.b16 %v253_v51  ;;  %v246_v57 = vpack.c.bf16 %v212_v53, %v212_v53 }
  0xcf   :  { %v327_v56 = vpack.c.b16 %v317_v55, %v316_v54  ;;  %v310_v60 = vunpack.c.l.b16 %v246_v57 }
  0xd1   :  { %419 = vmatmul.bf16.gmra.mxu3 %v327_v56 }
  0xd2   :  { %v232_v58 = vpop.f32.mrf.mxu2 }
  0xd3   :  { %v254_v0 = vpack.c.bf16 %v232_v58, %v232_v58 }
  0xd4   :  { %v214_v59 = vpop.f32.mrf.mxu0 }
  0xd5   :  { %v247_v61 = vpack.c.bf16 %v214_v59, %v214_v59  ;;  %v622_v62 = vpack.c.bf16 %v214_v59, %v212_v53  ;;  %v318_v6 = vunpack.c.l.b16 %v254_v0 }
  0xd7   :  { %650 = vst [vmem:[#allocation8 + $0x10] sm:$0xff] %v622_v62   ;;  %v311_v63 = vunpack.c.l.b16 %v247_v61 }
  0xd9   :  { %v324_v1 = vpack.c.b16 %v311_v63, %v310_v60 }
  0xda   :  { %v234_v2 = vpop.f32.mrf.mxu2 }
  0xdb   :  { %v255_v3 = vpack.c.bf16 %v234_v2, %v234_v2  ;;  %v642_v4 = vpack.c.bf16 %v234_v2, %v232_v58  ;;  %404 = vmatmul.bf16.gmra.mxu1 %v324_v1 }
  0xdc   :  { %v217_v5 = vpop.f32.mrf.mxu0 }
  0xdd   :  { %654 = vst [vmem:[#allocation8 + $0x30] sm:$0xff] %v642_v4   ;;  %v319_v7 = vunpack.c.l.b16 %v255_v3  ;;  %v248_v9 = vpack.c.bf16 %v217_v5, %v217_v5 }
  0xdf   :  { %v328_v8 = vpack.c.b16 %v319_v7, %v318_v6  ;;  %v312_v12 = vunpack.c.l.b16 %v248_v9 }
  0xe1   :  { %424 = vmatmul.bf16.gmra.mxu3 %v328_v8 }
  0xe2   :  { %v237_v10 = vpop.f32.mrf.mxu2 }
  0xe3   :  { %v256_v16 = vpack.c.bf16 %v237_v10, %v237_v10 }
  0xe4   :  { %v219_v11 = vpop.f32.mrf.mxu0 }
  0xe5   :  { %v249_v13 = vpack.c.bf16 %v219_v11, %v219_v11  ;;  %v627_v14 = vpack.c.bf16 %v219_v11, %v217_v5  ;;  %v320_v21 = vunpack.c.l.b16 %v256_v16 }
  0xe7   :  { %651 = vst [vmem:[#allocation8 + $0x18] sm:$0xff] %v627_v14   ;;  %v313_v15 = vunpack.c.l.b16 %v249_v13 }
  0xe9   :  { %v325_v17 = vpack.c.b16 %v313_v15, %v312_v12 }
  0xea   :  { %v239_v18 = vpop.f32.mrf.mxu2 }
  0xeb   :  { %v257_v19 = vpack.c.bf16 %v239_v18, %v239_v18  ;;  %v647_v20 = vpack.c.bf16 %v239_v18, %v237_v10  ;;  %409 = vmatmul.bf16.gmra.mxu1 %v325_v17 }
  0xed   :  { %655 = vst [vmem:[#allocation8 + $0x38] sm:$0xff] %v647_v20   ;;  %v321_v22 = vunpack.c.l.b16 %v257_v19 }
  0xee   :  { %463 = dma.vmem_to_hbm [thread:$0]  %s456_s30, 1024, %s458_s7, [#allocation4], %s810_s23, %s810_s23, %s811_s24  }
  0xef   :  { %v329_v23 = vpack.c.b16 %v321_v22, %v320_v21 }
  0xf1   :  { %429 = vmatmul.bf16.gmra.mxu3 %v329_v23 }
 0x138   :  { %v395_v24 = vpop.f32.mrf.mxu1 }
 0x139   :  { %435 = vst [vmem:[#allocation9] sm:$0xff] %v395_v24 }
 0x140   :  { %v397_v25 = vpop.f32.mrf.mxu1 }
 0x141   :  { %436 = vst [vmem:[#allocation9 + $0x8] sm:$0xff] %v397_v25 }
 0x144   :  { %v415_v26 = vpop.f32.mrf.mxu3 }
 0x145   :  { %443 = vst [vmem:[#allocation9 + $0x40] sm:$0xff] %v415_v26 }
 0x148   :  { %v400_v27 = vpop.f32.mrf.mxu1 }
 0x149   :  { %437 = vst [vmem:[#allocation9 + $0x10] sm:$0xff] %v400_v27 }
 0x14c   :  { %v417_v28 = vpop.f32.mrf.mxu3 }
 0x14d   :  { %444 = vst [vmem:[#allocation9 + $0x48] sm:$0xff] %v417_v28 }
 0x150   :  { %v402_v29 = vpop.f32.mrf.mxu1 }
 0x151   :  { %438 = vst [vmem:[#allocation9 + $0x18] sm:$0xff] %v402_v29 }
 0x154   :  { %v420_v30 = vpop.f32.mrf.mxu3 }
 0x155   :  { %445 = vst [vmem:[#allocation9 + $0x50] sm:$0xff] %v420_v30 }
 0x158   :  { %v405_v31 = vpop.f32.mrf.mxu1 }
 0x159   :  { %439 = vst [vmem:[#allocation9 + $0x20] sm:$0xff] %v405_v31 }
 0x15c   :  { %v422_v32 = vpop.f32.mrf.mxu3 }
 0x15d   :  { %446 = vst [vmem:[#allocation9 + $0x58] sm:$0xff] %v422_v32 }
 0x160   :  { %v407_v33 = vpop.f32.mrf.mxu1 }
 0x161   :  { %440 = vst [vmem:[#allocation9 + $0x28] sm:$0xff] %v407_v33 }
 0x164   :  { %v425_v34 = vpop.f32.mrf.mxu3 }
 0x165   :  { %447 = vst [vmem:[#allocation9 + $0x60] sm:$0xff] %v425_v34 }
 0x168   :  { %v410_v35 = vpop.f32.mrf.mxu1 }
 0x169   :  { %441 = vst [vmem:[#allocation9 + $0x30] sm:$0xff] %v410_v35 }
 0x16c   :  { %v427_v36 = vpop.f32.mrf.mxu3 }
 0x16d   :  { %448 = vst [vmem:[#allocation9 + $0x68] sm:$0xff] %v427_v36 }
 0x170   :  { %v412_v37 = vpop.f32.mrf.mxu1 }
 0x171   :  { %442 = vst [vmem:[#allocation9 + $0x38] sm:$0xff] %v412_v37 }
 0x174   :  { %v430_v38 = vpop.f32.mrf.mxu3 }
 0x175   :  { %449 = vst [vmem:[#allocation9 + $0x70] sm:$0xff] %v430_v38 }
 0x17c   :  { %v432_v39 = vpop.f32.mrf.mxu3 }
 0x17d   :  { %450 = vst [vmem:[#allocation9 + $0x78] sm:$0xff] %v432_v39 }
 0x17e   :  { %476 = dma.vmem_to_hbm [thread:$0]  %s469_s8, 2048, %s471_s11, [#allocation10], %s816_s12, %s816_s12, %s817_s13  }
 0x17f   :  { %805 = dma.done.wait [#allocation4], 1024  }
 0x180   :  { %806 = vsyncadd [#allocation4], 4294966272 }
 0x181   :  { %807 = dma.done.wait [#allocation10], 2048  }
 0x182   :  { %808 = vsyncadd [#allocation10], 4294965248 }
 0x183   :  { %485 = vsyncpa [#allocation3], 1 }
 0x184   :  { %486 = vsyncpa [#allocation6], 1 }
 0x185   :  { %487 = vsyncpa [#allocation4], 1 }
 0x186   :  { %488 = vsyncpa [#allocation10], 1 }

</bundles_post_ra>
